<compile_context>
chip_gen: v7x
topology: tpu7x:2x2x1
jax: 0.10.0
libtpu: 0.0.40
codegen_flags: <defaults>
</compile_context>

<pallas_src>
import functools

import jax
import jax.numpy as jnp
from jax.experimental import pallas as pl
from jax.experimental.pallas import tpu as pltpu

BN_EPS = 1e-5          # PyTorch BatchNorm1d default
LANE = 128
N_CLASSES = 10
NEG_BIG = -1e30        # "minus infinity" bias for padded logit columns


def _round_up(n, m):
    return ((n + m - 1) // m) * m


def _mlp_kernel(x_ref,
                w1_ref, b1_ref,
                w2_ref, b2_ref,
                w3_ref, b3_ref,
                out_ref):
    """Fused forward for one batch tile: 3 MXU dots (bf16 in, f32 acc) + f32 epilogue."""
    # Cast to bf16 in-kernel: x travels HBM->VMEM once as f32, no extra XLA pass.
    x = x_ref[...].astype(jnp.bfloat16)                                  # (TB, 784)

    # ---- Linear 1 (BN already folded) + ReLU -------------------------------
    h = jnp.dot(x, w1_ref[...], preferred_element_type=jnp.float32) + b1_ref[...]
    h = jnp.maximum(h, 0.0)
    # Dropout: eval-mode identity.
    # TODO(synk): train-mode stochastic dropout (pltpu.prng_random_bits) not emitted here.

    # ---- Linear 2 (BN folded) + ReLU ---------------------------------------
    h = jnp.dot(h.astype(jnp.bfloat16), w2_ref[...],
                preferred_element_type=jnp.float32) + b2_ref[...]
    h = jnp.maximum(h, 0.0)

    # ---- Linear 3 + LogSoftmax(dim=1) --------------------------------------
    logits = jnp.dot(h.astype(jnp.bfloat16), w3_ref[...],
                     preferred_element_type=jnp.float32) + b3_ref[...]
    # Padded logit columns carry a -1e30 bias -> exp() underflows to 0, so the
    # max / log-sum-exp over 128 lanes equals the one over the 10 real classes.
    m = jnp.max(logits, axis=1, keepdims=True)
    s = logits - m
    lse = jnp.log(jnp.sum(jnp.exp(s), axis=1, keepdims=True))
    out_ref[...] = (s - lse).astype(out_ref.dtype)                       # bf16 writeback


def prepare_params(params):
    """Fold eval-mode BatchNorm into the linears, pad lane dims to 128, cast weights to bf16.

    One-time wrapper-side cost, amortized over every forward call.
    """
    def fold(w, b, g, be, m, v):
        scale = g * jax.lax.rsqrt(v + BN_EPS)                            # (1, H)
        return w * scale, (b - m) * scale + be

    w1, b1 = fold(params["w1"], params["b1"], params["g1"], params["be1"],
                  params["m1"], params["v1"])
    w2, b2 = fold(params["w2"], params["b2"], params["g2"], params["be2"],
                  params["m2"], params["v2"])
    w3, b3 = params["w3"], params["b3"]

    d_in, h1 = w1.shape
    _, h2 = w2.shape
    _, n_out = w3.shape
    h1p = _round_up(h1, LANE)
    h2p = _round_up(h2, LANE)
    outp = _round_up(n_out, LANE)

    # Note: d_in = 784 is intentionally NOT padded (block equals full array dim,
    # which is legal; padding would only add HBM traffic).
    w1p = jnp.zeros((d_in, h1p), jnp.float32).at[:, :h1].set(w1)
    b1p = jnp.zeros((1, h1p), jnp.float32).at[:, :h1].set(b1)
    # Padded hidden1 columns produce h==0 after ReLU; padded hidden2 rows of w2
    # are zero, so padding never perturbs the real math.
    w2p = jnp.zeros((h1p, h2p), jnp.float32).at[:h1, :h2].set(w2)
    b2p = jnp.zeros((1, h2p), jnp.float32).at[:, :h2].set(b2)
    w3p = jnp.zeros((h2p, outp), jnp.float32).at[:h2, :n_out].set(w3)
    b3p = jnp.full((1, outp), NEG_BIG, jnp.float32).at[:, :n_out].set(b3)

    return {
        "w1": w1p.astype(jnp.bfloat16), "b1": b1p,
        "w2": w2p.astype(jnp.bfloat16), "b2": b2p,
        "w3": w3p.astype(jnp.bfloat16), "b3": b3p,
    }


@functools.partial(jax.jit, static_argnames=("block_b",))
def fully_connected_net(x_nchw, prepared, block_b=1024):
    """x_nchw: (B, 1, 28, 28) float32 (NCHW like PyTorch). Returns (B, 10) f32 log-probs."""
    B = x_nchw.shape[0]
    x = x_nchw.reshape(B, -1)                       # nn.Flatten(); stays f32 (no extra cast pass)
    d_in = x.shape[1]

    w1, b1 = prepared["w1"], prepared["b1"]
    w2, b2 = prepared["w2"], prepared["b2"]
    w3, b3 = prepared["w3"], prepared["b3"]
    h1p, h2p, outp = w1.shape[1], w2.shape[1], w3.shape[1]

    # Batch tile: large to amortize per-step overhead; for mid-size batches make
    # sure there are >= 2 grid steps so v7x megacore shards across both TCs.
    tb = min(block_b, _round_up(B, 8))
    if B > 128:
        tb = min(tb, _round_up(pl.cdiv(B, 2), 16))
    grid = (pl.cdiv(B, tb),)                        # ragged last block handled by Pallas

    const = lambda i: (0, 0)                        # weights/biases resident across steps
    flops = 2 * B * (d_in * h1p + h1p * h2p + h2p * outp)
    bytes_accessed = (B * d_in * 4                                       # x read (f32)
                      + (w1.size + w2.size + w3.size) * 2                # bf16 weights
                      + (b1.size + b2.size + b3.size) * 4                # f32 biases
                      + B * outp * 2)                                    # bf16 output

    out = pl.pallas_call(
        _mlp_kernel,
        out_shape=jax.ShapeDtypeStruct((B, outp), jnp.bfloat16),
        grid=grid,
        in_specs=[
            pl.BlockSpec((tb, d_in), lambda i: (i, 0)),
            pl.BlockSpec(w1.shape, const), pl.BlockSpec(b1.shape, const),
            pl.BlockSpec(w2.shape, const), pl.BlockSpec(b2.shape, const),
            pl.BlockSpec(w3.shape, const), pl.BlockSpec(b3.shape, const),
        ],
        out_specs=pl.BlockSpec((tb, outp), lambda i: (i, 0)),
        compiler_params=pltpu.CompilerParams(
            dimension_semantics=("parallel",),
            vmem_limit_bytes=32 << 20,
        ),
        cost_estimate=pl.CostEstimate(
            flops=flops,
            transcendentals=B * outp,
            bytes_accessed=bytes_accessed,
        ),
    )(x, w1, b1, w2, b2, w3, b3)

    return out[:, :N_CLASSES].astype(jnp.float32)


def reference_forward(x_nchw, prepared):
    """Plain-JAX reference with the same folded/padded/bf16 parameters."""
    B = x_nchw.shape[0]
    x = x_nchw.reshape(B, -1).astype(jnp.bfloat16)
    h = jnp.dot(x, prepared["w1"], preferred_element_type=jnp.float32) + prepared["b1"]
    h = jnp.maximum(h, 0.0)
    h = jnp.dot(h.astype(jnp.bfloat16), prepared["w2"],
                preferred_element_type=jnp.float32) + prepared["b2"]
    h = jnp.maximum(h, 0.0)
    logits = jnp.dot(h.astype(jnp.bfloat16), prepared["w3"],
                     preferred_element_type=jnp.float32) + prepared["b3"]
    return jax.nn.log_softmax(logits, axis=1)[:, :N_CLASSES]


def init_params(key, hidden1, hidden2):
    """Deterministic synthetic parameters matching the module's __init__ shapes."""
    ks = jax.random.split(key, 6)
    d_in, d_out = 28 * 28, N_CLASSES

    def lin(kw, kb, fan_in, fan_out):
        bound = 1.0 / jnp.sqrt(fan_in)
        w = jax.random.uniform(kw, (fan_in, fan_out), jnp.float32, -bound, bound)
        b = jax.random.uniform(kb, (1, fan_out), jnp.float32, -bound, bound)
        return w, b

    w1, b1 = lin(ks[0], ks[1], d_in, hidden1)
    w2, b2 = lin(ks[2], ks[3], hidden1, hidden2)
    w3, b3 = lin(ks[4], ks[5], hidden2, d_out)

    # BatchNorm1d defaults: gamma=1, beta=0, running_mean=0, running_var=1.
    return {
        "w1": w1, "b1": b1,
        "g1": jnp.ones((1, hidden1), jnp.float32), "be1": jnp.zeros((1, hidden1), jnp.float32),
        "m1": jnp.zeros((1, hidden1), jnp.float32), "v1": jnp.ones((1, hidden1), jnp.float32),
        "w2": w2, "b2": b2,
        "g2": jnp.ones((1, hidden2), jnp.float32), "be2": jnp.zeros((1, hidden2), jnp.float32),
        "m2": jnp.zeros((1, hidden2), jnp.float32), "v2": jnp.ones((1, hidden2), jnp.float32),
        "w3": w3, "b3": b3,
    }


if __name__ == "__main__":
    key = jax.random.PRNGKey(0)
    k_x, k_p = jax.random.split(key)

    B, hidden1, hidden2 = 8, 128, 64
    x = jax.random.normal(k_x, (B, 1, 28, 28), jnp.float32)              # MNIST-like NCHW
    params = init_params(k_p, hidden1, hidden2)
    prepared = prepare_params(params)                                    # one-time BN-fold + pad

    out = fully_connected_net(x, prepared)
    jax.block_until_ready(out)

    # sanity: shape, rows sum to ~1 in prob space (bf16 writeback), matches JAX reference
    assert out.shape == (B, N_CLASSES)
    assert bool(jnp.allclose(jnp.sum(jnp.exp(out), axis=1), 1.0, atol=2e-2))
    ref = reference_forward(x, prepared)
    assert bool(jnp.allclose(out, ref, atol=2e-2, rtol=2e-2))

    print("KERNEL_OK")
</pallas_src>

<mosaic_0001>
module attributes {stable_mosaic.version = 11 : i64} {
  func.func @_mlp_kernel(%arg0: i32, %arg1: memref<8x784xf32, #tpu.memory_space<vmem>>, %arg2: memref<784x128xbf16, #tpu.memory_space<vmem>>, %arg3: memref<1x128xf32, #tpu.memory_space<vmem>>, %arg4: memref<128x128xbf16, #tpu.memory_space<vmem>>, %arg5: memref<1x128xf32, #tpu.memory_space<vmem>>, %arg6: memref<128x128xbf16, #tpu.memory_space<vmem>>, %arg7: memref<1x128xf32, #tpu.memory_space<vmem>>, %arg8: memref<8x128xbf16, #tpu.memory_space<vmem>>) attributes {dimension_semantics = [#tpu.dimension_semantics<parallel>], iteration_bounds = array<i64: 1>, scalar_prefetch = 0 : i64, scratch_operands = 0 : i64, tpu.core_type = #tpu.core_type<tc>, window_params = [{transform_indices = @transform_0, window_bounds = array<i64: 8, 784>}, {pipeline_mode = #tpu.pipeline_mode<synchronous>, transform_indices = @transform_1, window_bounds = array<i64: 784, 128>}, {pipeline_mode = #tpu.pipeline_mode<synchronous>, transform_indices = @transform_2, window_bounds = array<i64: 1, 128>}, {pipeline_mode = #tpu.pipeline_mode<synchronous>, transform_indices = @transform_3, window_bounds = array<i64: 128, 128>}, {pipeline_mode = #tpu.pipeline_mode<synchronous>, transform_indices = @transform_4, window_bounds = array<i64: 1, 128>}, {pipeline_mode = #tpu.pipeline_mode<synchronous>, transform_indices = @transform_5, window_bounds = array<i64: 128, 128>}, {pipeline_mode = #tpu.pipeline_mode<synchronous>, transform_indices = @transform_6, window_bounds = array<i64: 1, 128>}, {transform_indices = @transform_7, window_bounds = array<i64: 8, 128>}]} {
    %c0 = arith.constant 0 : index
    %c0_0 = arith.constant 0 : index
    %0 = vector.load %arg1[%c0, %c0_0] : memref<8x784xf32, #tpu.memory_space<vmem>>, vector<8x784xf32>
    %1 = arith.truncf %0 : vector<8x784xf32> to vector<8x784xbf16>
    %c0_1 = arith.constant 0 : index
    %c0_2 = arith.constant 0 : index
    %2 = vector.load %arg2[%c0_1, %c0_2] : memref<784x128xbf16, #tpu.memory_space<vmem>>, vector<784x128xbf16>
    %cst = arith.constant dense<0.000000e+00> : vector<8x128xf32>
    %3 = tpu.matmul %1, %2, %cst {dimension_numbers = #tpu.dot_dimension_numbers<[1], [0], [0], [1], [0, 0, 1, 1], [], []>} : vector<8x784xbf16>, vector<784x128xbf16>, vector<8x128xf32> -> vector<8x128xf32>
    %c0_3 = arith.constant 0 : index
    %c0_4 = arith.constant 0 : index
    %4 = vector.load %arg3[%c0_3, %c0_4] : memref<1x128xf32, #tpu.memory_space<vmem>>, vector<1x128xf32>
    %5 = vector.broadcast %4 : vector<1x128xf32> to vector<8x128xf32>
    %6 = arith.addf %3, %5 : vector<8x128xf32>
    %cst_5 = arith.constant 0.000000e+00 : f32
    %7 = vector.broadcast %cst_5 : f32 to vector<8x128xf32>
    %8 = arith.maximumf %6, %7 : vector<8x128xf32>
    %9 = arith.truncf %8 : vector<8x128xf32> to vector<8x128xbf16>
    %c0_6 = arith.constant 0 : index
    %c0_7 = arith.constant 0 : index
    %10 = vector.load %arg4[%c0_6, %c0_7] : memref<128x128xbf16, #tpu.memory_space<vmem>>, vector<128x128xbf16>
    %cst_8 = arith.constant dense<0.000000e+00> : vector<8x128xf32>
    %11 = tpu.matmul %9, %10, %cst_8 {dimension_numbers = #tpu.dot_dimension_numbers<[1], [0], [0], [1], [0, 0, 1, 1], [], []>} : vector<8x128xbf16>, vector<128x128xbf16>, vector<8x128xf32> -> vector<8x128xf32>
    %c0_9 = arith.constant 0 : index
    %c0_10 = arith.constant 0 : index
    %12 = vector.load %arg5[%c0_9, %c0_10] : memref<1x128xf32, #tpu.memory_space<vmem>>, vector<1x128xf32>
    %13 = vector.broadcast %12 : vector<1x128xf32> to vector<8x128xf32>
    %14 = arith.addf %11, %13 : vector<8x128xf32>
    %cst_11 = arith.constant 0.000000e+00 : f32
    %15 = vector.broadcast %cst_11 : f32 to vector<8x128xf32>
    %16 = arith.maximumf %14, %15 : vector<8x128xf32>
    %17 = arith.truncf %16 : vector<8x128xf32> to vector<8x128xbf16>
    %c0_12 = arith.constant 0 : index
    %c0_13 = arith.constant 0 : index
    %18 = vector.load %arg6[%c0_12, %c0_13] : memref<128x128xbf16, #tpu.memory_space<vmem>>, vector<128x128xbf16>
    %cst_14 = arith.constant dense<0.000000e+00> : vector<8x128xf32>
    %19 = tpu.matmul %17, %18, %cst_14 {dimension_numbers = #tpu.dot_dimension_numbers<[1], [0], [0], [1], [0, 0, 1, 1], [], []>} : vector<8x128xbf16>, vector<128x128xbf16>, vector<8x128xf32> -> vector<8x128xf32>
    %c0_15 = arith.constant 0 : index
    %c0_16 = arith.constant 0 : index
    %20 = vector.load %arg7[%c0_15, %c0_16] : memref<1x128xf32, #tpu.memory_space<vmem>>, vector<1x128xf32>
    %21 = vector.broadcast %20 : vector<1x128xf32> to vector<8x128xf32>
    %22 = arith.addf %19, %21 : vector<8x128xf32>
    %cst_17 = arith.constant dense<0xFF800000> : vector<8xf32>
    %23 = vector.multi_reduction <maximumf>, %22, %cst_17 [1] : vector<8x128xf32> to vector<8xf32>
    %24 = vector.shape_cast %23 : vector<8xf32> to vector<8x1xf32>
    %25 = vector.broadcast %24 : vector<8x1xf32> to vector<8x128xf32>
    %26 = arith.subf %22, %25 : vector<8x128xf32>
    %27 = math.exp %26 : vector<8x128xf32>
    %cst_18 = arith.constant dense<0.000000e+00> : vector<8xf32>
    %28 = vector.multi_reduction <add>, %27, %cst_18 [1] : vector<8x128xf32> to vector<8xf32>
    %29 = vector.shape_cast %28 : vector<8xf32> to vector<8x1xf32>
    %30 = math.log %29 : vector<8x1xf32>
    %31 = vector.broadcast %30 : vector<8x1xf32> to vector<8x128xf32>
    %32 = arith.subf %26, %31 : vector<8x128xf32>
    %33 = arith.truncf %32 : vector<8x128xf32> to vector<8x128xbf16>
    %c0_19 = arith.constant 0 : index
    %c0_20 = arith.constant 0 : index
    %34 = vector.load %arg8[%c0_19, %c0_20] : memref<8x128xbf16, #tpu.memory_space<vmem>>, vector<8x128xbf16>
    tpu.vector_store %arg8[%c0_19, %c0_20], %33 {strides = array<i32>} : memref<8x128xbf16, #tpu.memory_space<vmem>>, vector<8x128xbf16>,
    return
  }
  func.func @transform_0(%arg0: i32) -> (i32, i32) {
    %c0_i32 = arith.constant 0 : i32
    %c0_i32_0 = arith.constant 0 : i32
    return %arg0, %c0_i32 : i32, i32
  }
  func.func @transform_1(%arg0: i32) -> (i32, i32) {
    %c0_i32 = arith.constant 0 : i32
    %c0_i32_0 = arith.constant 0 : i32
    %c0_i32_1 = arith.constant 0 : i32
    return %c0_i32, %c0_i32_0 : i32, i32
  }
  func.func @transform_2(%arg0: i32) -> (i32, i32) {
    %c0_i32 = arith.constant 0 : i32
    %c0_i32_0 = arith.constant 0 : i32
    %c0_i32_1 = arith.constant 0 : i32
    return %c0_i32, %c0_i32_0 : i32, i32
  }
  func.func @transform_3(%arg0: i32) -> (i32, i32) {
    %c0_i32 = arith.constant 0 : i32
    %c0_i32_0 = arith.constant 0 : i32
    %c0_i32_1 = arith.constant 0 : i32
    return %c0_i32, %c0_i32_0 : i32, i32
  }
  func.func @transform_4(%arg0: i32) -> (i32, i32) {
    %c0_i32 = arith.constant 0 : i32
    %c0_i32_0 = arith.constant 0 : i32
    %c0_i32_1 = arith.constant 0 : i32
    return %c0_i32, %c0_i32_0 : i32, i32
  }
  func.func @transform_5(%arg0: i32) -> (i32, i32) {
    %c0_i32 = arith.constant 0 : i32
    %c0_i32_0 = arith.constant 0 : i32
    %c0_i32_1 = arith.constant 0 : i32
    return %c0_i32, %c0_i32_0 : i32, i32
  }
  func.func @transform_6(%arg0: i32) -> (i32, i32) {
    %c0_i32 = arith.constant 0 : i32
    %c0_i32_0 = arith.constant 0 : i32
    %c0_i32_1 = arith.constant 0 : i32
    return %c0_i32, %c0_i32_0 : i32, i32
  }
  func.func @transform_7(%arg0: i32) -> (i32, i32) {
    %c0_i32 = arith.constant 0 : i32
    %c0_i32_0 = arith.constant 0 : i32
    return %arg0, %c0_i32 : i32, i32
  }
}

</mosaic_0001>

<bundles_post_ra>
// kernel: fully_connected_net.1
= control target key start
LH: loop header
LB: loop body
LE: loop exit
PB: predicated region body
PF: predicated region fallthrough
CT: control target
= control target key end

     0   :  { %v1118_v44 = vmov 0.0   ;;  %vm1119_vm0 = vmmov 0   ;;  %vm440_vm1 = vcmask 130048   ;;  %s1411_s1 = inlined_call_operand.vmem [shape: bf16[784,128], index: 1, kind: input, shape index: {}]   ;;  %s1412_s0 = inlined_call_operand.vmem [shape: f32[8,784], index: 0, kind: input, shape index: {}]   ;;  %s1413_s3 = inlined_call_operand.vmem [shape: bf16[128,128], index: 3, kind: input, shape index: {}]   ;;  %s1414_s5 = inlined_call_operand.vmem [shape: bf16[128,128], index: 5, kind: input, shape index: {}]   ;;  %s1415_s2 = inlined_call_operand.vmem [shape: f32[1,128], index: 2, kind: input, shape index: {}]   ;;  %s1416_s4 = inlined_call_operand.vmem [shape: f32[1,128], index: 4, kind: input, shape index: {}]   ;;  %s1417_s6 = inlined_call_operand.vmem [shape: f32[1,128], index: 6, kind: input, shape index: {}]   ;;  %s1418_s7 = inlined_call_operand.vmem [shape: bf16[8,128], index: 7, kind: output, shape index: {}]  }
   0x1   :  { %v1049_v0 = vld [vmem:[%s1411_s1 + $0x40] sm:$0xff]   ;;  %v1053_v4 = vld [vmem:[%s1411_s1 + $0x48] sm:$0xff]   ;;  %v1057_v8 = vld [vmem:[%s1411_s1 + $0x50] sm:$0xff]  }
   0x2   :  { %v1050_v1 = vld [vmem:[%s1411_s1] sm:$0xff]   ;;  %915 = vmatprep.subr.bf16.mxu0 %v1049_v0  ;;  %v1054_v5 = vld [vmem:[%s1411_s1 + $0x8] sm:$0xff]   ;;  %v1058_v9 = vld [vmem:[%s1411_s1 + $0x10] sm:$0xff]  }
   0x3   :  { %v1051_v2 = vld [vmem:[%s1411_s1 + $0xc0] sm:$0xff]   ;;  %916 = vmatpush3.bf16.msra.mxu0 %v1050_v1  ;;  %v1055_v6 = vld [vmem:[%s1411_s1 + $0xc8] sm:$0xff]   ;;  %v1059_v10 = vld [vmem:[%s1411_s1 + $0xd0] sm:$0xff]  }
   0x4   :  { %v1052_v3 = vld [vmem:[%s1411_s1 + $0x80] sm:$0xff]   ;;  %937 = vmatprep.subr.bf16.mxu1 %v1051_v2  ;;  %917 = vmatprep.subr.bf16.mxu0 %v1053_v4  ;;  %v1056_v7 = vld [vmem:[%s1411_s1 + $0x88] sm:$0xff]   ;;  %v1060_v11 = vld [vmem:[%s1411_s1 + $0x90] sm:$0xff]  }
   0x5   :  { %938 = vmatpush3.bf16.msra.mxu1 %v1052_v3  ;;  %v1061_v12 = vld [vmem:[%s1411_s1 + $0x58] sm:$0xff]   ;;  %v1065_v16 = vld [vmem:[%s1411_s1 + $0x60] sm:$0xff]   ;;  %v1069_v20 = vld [vmem:[%s1411_s1 + $0x68] sm:$0xff]  }
   0x6   :  { %939 = vmatprep.subr.bf16.mxu1 %v1055_v6  ;;  %v1062_v13 = vld [vmem:[%s1411_s1 + $0x18] sm:$0xff]   ;;  %v1066_v17 = vld [vmem:[%s1411_s1 + $0x20] sm:$0xff]   ;;  %v1070_v21 = vld [vmem:[%s1411_s1 + $0x28] sm:$0xff]  }
   0x7   :  { %918 = vmatpush3.bf16.msra.mxu0 %v1054_v5  ;;  %v1063_v14 = vld [vmem:[%s1411_s1 + $0xd8] sm:$0xff]   ;;  %v1067_v18 = vld [vmem:[%s1411_s1 + $0xe0] sm:$0xff]   ;;  %v1071_v22 = vld [vmem:[%s1411_s1 + $0xe8] sm:$0xff]  }
   0x8   :  { %919 = vmatprep.subr.bf16.mxu0 %v1057_v8  ;;  %v1064_v15 = vld [vmem:[%s1411_s1 + $0x98] sm:$0xff]   ;;  %v1068_v19 = vld [vmem:[%s1411_s1 + $0xa0] sm:$0xff]   ;;  %v1072_v23 = vld [vmem:[%s1411_s1 + $0xa8] sm:$0xff]  }
   0x9   :  { %940 = vmatpush3.bf16.msra.mxu1 %v1056_v7  ;;  %v1073_v24 = vld [vmem:[%s1411_s1 + $0x70] sm:$0xff]   ;;  %v1077_v28 = vld [vmem:[%s1411_s1 + $0x78] sm:$0xff]   ;;  %v28_v31 = vld [vmem:[%s1412_s0 + $0x8] sm:$0xff] }
   0xa   :  { %941 = vmatprep.subr.bf16.mxu1 %v1059_v10  ;;  %v1074_v25 = vld [vmem:[%s1411_s1 + $0x30] sm:$0xff]   ;;  %v1078_v29 = vld [vmem:[%s1411_s1 + $0x38] sm:$0xff]   ;;  %v35_v32 = vpack.c.bf16 %v28_v31, %v28_v31  ;;  %v27_v34 = vld [vmem:[%s1412_s0] sm:$0xff] }
   0xb   :  { %920 = vmatpush3.bf16.msra.mxu0 %v1058_v9  ;;  %v1075_v26 = vld [vmem:[%s1411_s1 + $0xf0] sm:$0xff]   ;;  %v1079_v30 = vld [vmem:[%s1411_s1 + $0xf8] sm:$0xff]   ;;  %v34_v35 = vpack.c.bf16 %v27_v34, %v27_v34  ;;  %v1081_v36 = vld [vmem:[%s1411_s1 + $0x140] sm:$0xff]  }
   0xc   :  { %921 = vmatprep.subr.bf16.mxu0 %v1061_v12  ;;  %v1076_v27 = vld [vmem:[%s1411_s1 + $0xb0] sm:$0xff]   ;;  %v1080_v33 = vld [vmem:[%s1411_s1 + $0xb8] sm:$0xff]   ;;  %476 = vmatprep.mubr.bf16.mxu0 %v35_v32  ;;  %v1082_v39 = vld [vmem:[%s1411_s1 + $0x100] sm:$0xff]  }
   0xd   :  { %942 = vmatpush3.bf16.msra.mxu1 %v1060_v11  ;;  %v30_v37 = vld [vmem:[%s1412_s0 + $0x18] sm:$0xff]  ;;  %v29_v40 = vld [vmem:[%s1412_s0 + $0x10] sm:$0xff]  ;;  %v1083_v42 = vld [vmem:[%s1411_s1 + $0x148] sm:$0xff]  }
   0xe   :  { %943 = vmatprep.subr.bf16.mxu1 %v1063_v14  ;;  %v37_v38 = vpack.c.bf16 %v30_v37, %v30_v37  ;;  %v36_v41 = vpack.c.bf16 %v29_v40, %v29_v40  ;;  %v1084_v43 = vld [vmem:[%s1411_s1 + $0x108] sm:$0xff]   ;;  %v1085_v45 = vld [vmem:[%s1411_s1 + $0x150] sm:$0xff]   ;;  %v1087_v47 = vld [vmem:[%s1411_s1 + $0x158] sm:$0xff]  }
   0xf   :  { %922 = vmatpush3.bf16.msra.mxu0 %v1062_v13  ;;  %v1086_v46 = vld [vmem:[%s1411_s1 + $0x110] sm:$0xff]   ;;  %v1088_v48 = vld [vmem:[%s1411_s1 + $0x118] sm:$0xff]   ;;  %v1089_v49 = vld [vmem:[%s1411_s1 + $0x160] sm:$0xff]  }
  0x10   :  { %923 = vmatprep.subr.bf16.mxu0 %v1065_v16  ;;  %516 = vmatprep.mubr.bf16.mxu1 %v37_v38  ;;  %v1090_v50 = vld [vmem:[%s1411_s1 + $0x120] sm:$0xff]   ;;  %v1091_v51 = vld [vmem:[%s1411_s1 + $0x168] sm:$0xff]   ;;  %v33_v55 = vld [vmem:[%s1412_s0 + $0x30] sm:$0xff] }
  0x11   :  { %944 = vmatpush3.bf16.msra.mxu1 %v1064_v15  ;;  %v1097_v52 = vld [vmem:[%s1411_s1 + $0x180] sm:$0xff]   ;;  %v32_v53 = vld [vmem:[%s1412_s0 + $0x28] sm:$0xff]  ;;  %v40_v57 = vpack.c.bf16 %v33_v55, %v33_v55  ;;  %v1093_v58 = vld [vmem:[%s1411_s1 + $0x170] sm:$0xff]  }
  0x12   :  { %945 = vmatprep.subr.bf16.mxu1 %v1067_v18  ;;  %v39_v54 = vpack.c.bf16 %v32_v53, %v32_v53  ;;  %v1092_v56 = vld [vmem:[%s1411_s1 + $0x128] sm:$0xff]   ;;  %v1094_v59 = vld [vmem:[%s1411_s1 + $0x130] sm:$0xff]   ;;  %v1095_v60 = vld [vmem:[%s1411_s1 + $0x178] sm:$0xff]  }
  0x13   :  { %924 = vmatpush3.bf16.msra.mxu0 %v1066_v17  ;;  %v1096_v61 = vld [vmem:[%s1411_s1 + $0x138] sm:$0xff]   ;;  %v31_v62 = vld [vmem:[%s1412_s0 + $0x20] sm:$0xff]  ;;  %v1099_v1 = vld [vmem:[%s1413_s3 + $0x8] sm:$0xff]  }
  0x14   :  { %925 = vmatprep.subr.bf16.mxu0 %v1069_v20  ;;  %v38_v63 = vpack.c.bf16 %v31_v62, %v31_v62  ;;  %v1098_v0 = vld [vmem:[%s1413_s3] sm:$0xff]   ;;  %v1100_v2 = vld [vmem:[%s1413_s3 + $0x10] sm:$0xff]   ;;  %v1101_v3 = vld [vmem:[%s1413_s3 + $0x18] sm:$0xff]  }
  0x15   :  { %946 = vmatpush3.bf16.msra.mxu1 %v1068_v19  ;;  %v1102_v4 = vld [vmem:[%s1413_s3 + $0x20] sm:$0xff]   ;;  %v1103_v5 = vld [vmem:[%s1413_s3 + $0x28] sm:$0xff]   ;;  %v1104_v6 = vld [vmem:[%s1413_s3 + $0x30] sm:$0xff]  }
  0x16   :  { %947 = vmatprep.subr.bf16.mxu1 %v1071_v22  ;;  %v1105_v7 = vld [vmem:[%s1413_s3 + $0x38] sm:$0xff]   ;;  %v1106_v8 = vld [vmem:[%s1414_s5] sm:$0xff]   ;;  %v1107_v9 = vld [vmem:[%s1414_s5 + $0x8] sm:$0xff]  }
  0x17   :  { %926 = vmatpush3.bf16.msra.mxu0 %v1070_v21  ;;  %v1108_v10 = vld [vmem:[%s1414_s5 + $0x10] sm:$0xff]   ;;  %v1109_v11 = vld [vmem:[%s1414_s5 + $0x18] sm:$0xff]   ;;  %v1110_v12 = vld [vmem:[%s1414_s5 + $0x20] sm:$0xff]  }
  0x18   :  { %927 = vmatprep.subr.bf16.mxu0 %v1073_v24  ;;  %v1111_v13 = vld [vmem:[%s1414_s5 + $0x28] sm:$0xff]   ;;  %v846_v15 = vld [vmem:[%s1415_s2] ss:$0 sm:$0xff]  ;;  %v1112_v40 = vld [vmem:[%s1414_s5 + $0x30] sm:$0xff]  }
  0x19   :  { %948 = vmatpush3.bf16.msra.mxu1 %v1072_v23 }
  0x1a   :  { %949 = vmatprep.subr.bf16.mxu1 %v1075_v26 }
  0x1b   :  { %928 = vmatpush3.bf16.msra.mxu0 %v1074_v25 }
  0x1c   :  { %929 = vmatprep.subr.bf16.mxu0 %v1077_v28 }
  0x1d   :  { %950 = vmatpush3.bf16.msra.mxu1 %v1076_v27 }
  0x1e   :  { %951 = vmatprep.subr.bf16.mxu1 %v1079_v30 }
  0x1f   :  { %930 = vmatpush3.bf16.msra.mxu0 %v1078_v29 }
  0x20   :  { %959 = vmatprep.subr.bf16.mxu0 %v1081_v36 }
  0x21   :  { %952 = vmatpush3.bf16.msra.mxu1 %v1080_v33 }
  0x22   :  { %477 = vmatmul.mubr.bf16.vlgmr.msra.gmra.mrb[0].mxu0 %v34_v35  ;;  %1001 = vmatprep.subr.bf16.mxu1 %v1118_v44 }
  0x23   :  { %960 = vmatpush3.bf16.msra.mxu0 %v1082_v39  ;;  %556 = vmatprep.mubr.bf16.mxu0 %v39_v54 }
  0x24   :  { %517 = vmatmul.mubr.bf16.vlgmr.msra.gmra.mrb[0].mxu1 %v36_v41  ;;  %961 = vmatprep.subr.bf16.mxu0 %v1083_v42  ;;  %v1113_v41 = vld [vmem:[%s1414_s5 + $0x38] sm:$0xff]   ;;  %v897_v42 = vld [vmem:[%s1416_s4] ss:$0 sm:$0xff] }
  0x25   :  { %1003 = vmatprep.mubr.msk.bf16.mxu1 %vm1119_vm0, %v1118_v44  ;;  %1002 = vmatpush3.bf16.msra.mxu1 %v1097_v52 }
  0x26   :  { %1007 = vmatprep.subr.bf16.mxu1 %v1118_v44 }
  0x27   :  { %962 = vmatpush3.bf16.msra.mxu0 %v1084_v43 }
  0x28   :  { %963 = vmatprep.subr.bf16.mxu0 %v1085_v45 }
  0x2b   :  { %964 = vmatpush3.bf16.msra.mxu0 %v1086_v46 }
  0x2c   :  { %965 = vmatprep.subr.bf16.mxu0 %v1087_v47  ;;  %1004 = vmatmul.mubr.msk.bf16.vlgmr.msra.gmra.mrb[4].mxu1 %vm440_vm1, %v40_v57 }
  0x2d   :  { %1023 = vmatprep.mubr.msk.bf16.mxu1 %vm1119_vm0, %v1118_v44  ;;  %1008 = vmatpush3.bf16.msra.mxu1 %v1098_v0 }
  0x2e   :  { %1009 = vmatprep.subr.bf16.mxu1 %v1118_v44 }
  0x2f   :  { %966 = vmatpush3.bf16.msra.mxu0 %v1088_v48 }
  0x30   :  { %967 = vmatprep.subr.bf16.mxu0 %v1089_v49 }
  0x31   :  { %1010 = vmatpush3.bf16.msra.mxu1 %v1099_v1 }
  0x32   :  { %1011 = vmatprep.subr.bf16.mxu1 %v1118_v44 }
  0x33   :  { %968 = vmatpush3.bf16.msra.mxu0 %v1090_v50 }
  0x34   :  { %969 = vmatprep.subr.bf16.mxu0 %v1091_v51 }
  0x35   :  { %1012 = vmatpush3.bf16.msra.mxu1 %v1100_v2 }
  0x36   :  { %1013 = vmatprep.subr.bf16.mxu1 %v1118_v44 }
  0x37   :  { %970 = vmatpush3.bf16.msra.mxu0 %v1092_v56 }
  0x38   :  { %971 = vmatprep.subr.bf16.mxu0 %v1093_v58 }
  0x39   :  { %1014 = vmatpush3.bf16.msra.mxu1 %v1101_v3 }
  0x3a   :  { %1015 = vmatprep.subr.bf16.mxu1 %v1118_v44 }
  0x3b   :  { %972 = vmatpush3.bf16.msra.mxu0 %v1094_v59 }
  0x3c   :  { %973 = vmatprep.subr.bf16.mxu0 %v1095_v60 }
  0x3d   :  { %1016 = vmatpush3.bf16.msra.mxu1 %v1102_v4 }
  0x3e   :  { %1017 = vmatprep.subr.bf16.mxu1 %v1118_v44 }
  0x3f   :  { %974 = vmatpush3.bf16.msra.mxu0 %v1096_v61 }
  0x40   :  { %1027 = vmatprep.subr.bf16.mxu0 %v1118_v44 }
  0x41   :  { %1018 = vmatpush3.bf16.msra.mxu1 %v1103_v5 }
  0x42   :  { %557 = vmatmul.mubr.bf16.vlgmr.msra.gmra.mrb[4].mxu0 %v38_v63  ;;  %1019 = vmatprep.subr.bf16.mxu1 %v1118_v44 }
  0x43   :  { %1043 = vmatprep.mubr.msk.bf16.mxu0 %vm1119_vm0, %v1118_v44  ;;  %1028 = vmatpush3.bf16.msra.mxu0 %v1106_v8 }
  0x44   :  { %1029 = vmatprep.subr.bf16.mxu0 %v1118_v44 }
  0x45   :  { %1020 = vmatpush3.bf16.msra.mxu1 %v1104_v6 }
  0x46   :  { %1021 = vmatprep.subr.bf16.mxu1 %v1118_v44 }
  0x47   :  { %1030 = vmatpush3.bf16.msra.mxu0 %v1107_v9 }
  0x48   :  { %1031 = vmatprep.subr.bf16.mxu0 %v1118_v44 }
  0x49   :  { %1022 = vmatpush3.bf16.msra.mxu1 %v1105_v7 }
  0x4b   :  { %1032 = vmatpush3.bf16.msra.mxu0 %v1108_v10 }
  0x4c   :  { %1033 = vmatprep.subr.bf16.mxu0 %v1118_v44 }
  0x4f   :  { %1034 = vmatpush3.bf16.msra.mxu0 %v1109_v11 }
  0x50   :  { %1035 = vmatprep.subr.bf16.mxu0 %v1118_v44 }
  0x53   :  { %1036 = vmatpush3.bf16.msra.mxu0 %v1110_v12 }
  0x54   :  { %1037 = vmatprep.subr.bf16.mxu0 %v1118_v44 }
  0x57   :  { %1038 = vmatpush3.bf16.msra.mxu0 %v1111_v13 }
  0x58   :  { %1039 = vmatprep.subr.bf16.mxu0 %v1118_v44 }
  0x5b   :  { %1040 = vmatpush3.bf16.msra.mxu0 %v1112_v40 }
  0x5c   :  { %1041 = vmatprep.subr.bf16.mxu0 %v1118_v44  ;;  %v906_v44 = vld [vmem:[%s1417_s6] ss:$0 sm:$0xff] }
  0x5f   :  { %1042 = vmatpush3.bf16.msra.mxu0 %v1113_v41 }
  0xf5   :  { %v931_v14 = vpop.f32.mrb[0].mxu0 }
  0xf6   :  { %v932_v16 = vpop.f32.mrb[1].mxu0 }
  0xf7   :  { %v933_v17 = vadd.f32 %v932_v16, %v931_v14  ;;  %v934_v18 = vpop.f32.mrb[2].mxu0  ;;  %v953_v19 = vpop.f32.mrb[0].mxu1 }
  0xf8   :  { %v935_v20 = vpop.f32.mrb[3].mxu0  ;;  %v954_v22 = vpop.f32.mrb[1].mxu1 }
  0xf9   :  { %v479_v21 = vadd.f32 %v933_v17, %v846_v15  ;;  %v955_v23 = vadd.f32 %v954_v22, %v953_v19  ;;  %v956_v24 = vpop.f32.mrb[2].mxu1 }
  0xfa   :  { %v957_v25 = vpop.f32.mrb[3].mxu1 }
  0xfb   :  { %v519_v26 = vadd.f32 %v955_v23, %v479_v21 }
  0xff   :  { %v598_v27 = vpop.f32.mrb[4].mxu1 }
 0x100   :  { %v1005_v28 = vpop.f32.mrb[5].mxu1 }
 0x101   :  { %v601_v29 = vpop.f32.mrb[6].mxu1 }
 0x102   :  { %v1006_v30 = vpop.f32.mrb[7].mxu1 }
 0x115   :  { %v975_v31 = vpop.f32.mrb[4].mxu0 }
 0x116   :  { %v976_v32 = vpop.f32.mrb[5].mxu0 }
 0x117   :  { %v977_v33 = vadd.f32 %v976_v32, %v975_v31  ;;  %v978_v34 = vpop.f32.mrb[6].mxu0 }
 0x118   :  { %v979_v35 = vpop.f32.mrb[7].mxu0 }
 0x119   :  { %v559_v36 = vadd.f32 %v977_v33, %v519_v26 }
 0x11b   :  { %v599_v37 = vadd.f32 %v598_v27, %v559_v36 }
 0x11d   :  { %v604_v38 = vmax.f32 %v599_v37, 0.0 }
 0x11f   :  { %v605_v39 = vpack.c.bf16 %v604_v38, %v604_v38 }
 0x121   :  { %1024 = vmatmul.mubr.bf16.vlgmr.msra.gmra.mrb[8].mxu1 %v605_v39 }
 0x1f4   :  { %v711_v43 = vpop.f32.mrb[8].mxu1 }
 0x1f5   :  { %v712_v45 = vadd.f32 %v897_v42, %v711_v43  ;;  %v1025_v46 = vpop.f32.mrb[9].mxu1 }
 0x1f6   :  { %v714_v47 = vpop.f32.mrb[10].mxu1 }
 0x1f7   :  { %v717_v48 = vmax.f32 %v712_v45, 0.0  ;;  %v1026_v49 = vpop.f32.mrb[11].mxu1 }
 0x1f9   :  { %v718_v50 = vpack.c.bf16 %v717_v48, %v717_v48 }
 0x1fb   :  { %1044 = vmatmul.mubr.bf16.vlgmr.msra.gmra.mrb[8].mxu0 %v718_v50 }
 0x2ce   :  { %v824_v51 = vpop.f32.mrb[8].mxu0 }
 0x2cf   :  { %v825_v52 = vadd.f32 %v906_v44, %v824_v51  ;;  %v1045_v53 = vpop.f32.mrb[9].mxu0 }
 0x2d0   :  { %v827_v54 = vpop.f32.mrb[10].mxu0 }
 0x2d1   :  { %830 = vmax.xlane.f32.xlu0 %v825_v52  ;;  %v1046_v55 = vpop.f32.mrb[11].mxu0 }
 0x35e   :  { %v831_v56 = vpop.xlane.xlu0 %830 }
 0x35f   :  { %v832_v57 = vsub.f32 %v825_v52, %v831_v56 }
 0x361   :  { %v833_v58 = vmul.f32 1.442695, %v832_v57 }
 0x363   :  { %1114 = vpow2.f32 %v833_v58 }
 0x36d   :  { %v1115_v59 = vpop.eup %1114 }
 0x36e   :  { %835 = vadd.xlane.f32.xlu0 %v1115_v59 }
 0x3fb   :  { %v836_v60 = vpop.xlane.xlu0 %835 }
 0x3fc   :  { %1116 = vlog2.f32 %v836_v60 }
 0x406   :  { %v1117_v61 = vpop.eup %1116 }
 0x407   :  { %v838_v62 = vmul.f32 0.6931472, %v1117_v61 }
 0x409   :  { %v839_v63 = vsub.f32 %v832_v57, %v838_v62 }
 0x40b   :  { %v840_v0 = vpack.c.bf16 %v839_v63, %v839_v63 }
 0x40d   :  { %841 = vst [vmem:[%s1418_s7] sm:$0xf] %v840_v0 }

</bundles_post_ra>
